<compile_context>
chip_gen: v6e
topology: v6e:2x2x1
jax: 0.10.0
libtpu: 0.0.40
codegen_flags: <defaults>
</compile_context>

<pallas_src>
import functools

import jax
import jax.numpy as jnp
from jax.experimental import pallas as pl
from jax.experimental.pallas import tpu as pltpu

BN_EPS = 1e-5
NEG_BIG = -1e30   # padded-logit bias: exp() underflows to exactly 0
LANES = 128       # lane width of a vreg


def _round_up(v, m):
    return (v + m - 1) // m * m


def _make_kernel(batch, dim, dim_pad, hpad, n_mid, off_wm, off_wl, off_v):
    """Build the fused MLP kernel. All sizes/offsets are static (closure)."""
    inv_n = 1.0 / batch  # static, exact for power-of-two batch

    def kernel(x_ref, w_ref, out_ref):
        # ---- activations -------------------------------------------------
        x = x_ref[...].astype(jnp.bfloat16)
        if dim_pad != dim:
            # In-kernel lane pad (avoids a wrapper-side XLA pad of x).
            x = jnp.concatenate(
                [x, jnp.zeros((batch, dim_pad - dim), jnp.bfloat16)], axis=1)

        # ---- single packed bf16 slab; static sublane slices ---------------
        w1 = w_ref[pl.ds(0, dim_pad), :]          # (dim_pad, hpad)
        wm = w_ref[pl.ds(off_wm, hpad), :]        # (hpad,    hpad)
        wl = w_ref[pl.ds(off_wl, hpad), :]        # (hpad,    hpad)
        v = w_ref[pl.ds(off_v, 16), :].astype(jnp.float32)   # 9 param rows
        b1, g1, be1 = v[0:1, :], v[1:2, :], v[2:3, :]
        bm, gm, bem = v[3:4, :], v[4:5, :], v[5:6, :]
        bl = v[6:7, :]

        def linear_relu(h_f32, w, b):
            y = jnp.dot(h_f32.astype(jnp.bfloat16), w,
                        preferred_element_type=jnp.float32) + b
            return jnp.maximum(y, 0.0)

        def batchnorm(h, gamma, beta):
            # Training-mode BatchNorm1d, E[x]/E[x^2] form (both reductions
            # depend only on h -> pipeline on the XLU).  All math in f32.
            s1 = jnp.sum(h, axis=0, keepdims=True)
            s2 = jnp.sum(h * h, axis=0, keepdims=True)
            mean = s1 * inv_n
            var = jnp.maximum(s2 * inv_n - mean * mean, 0.0)  # guard cancellation
            scale = gamma * jax.lax.rsqrt(var + BN_EPS)        # (1, hpad)
            return scale * h + (beta - scale * mean)

        # first_layer: Linear -> ReLU -> BatchNorm1d
        h = jnp.maximum(
            jnp.dot(x, w1, preferred_element_type=jnp.float32) + b1, 0.0)
        h = batchnorm(h, g1, be1)

        # mid_layers: n_mid applications of the SAME shared block (matches the
        # PyTorch module-aliasing semantics).  Static unroll; params hoisted.
        for _ in range(n_mid):
            h = batchnorm(linear_relu(h, wm, bm), gm, bem)

        # last_layer: Linear -> Softmax.  Padded lanes carry a -1e30 bias so
        # exp() makes them exactly 0; the wrapper slices them away.
        logits = jnp.dot(h.astype(jnp.bfloat16), wl,
                         preferred_element_type=jnp.float32) + bl
        m = jnp.max(logits, axis=1, keepdims=True)
        e = jnp.exp(logits - m)
        s = jnp.sum(e, axis=1, keepdims=True)
        # EUP reciprocal + one Newton step (divide off the VALU, ~f32 accurate).
        inv = pl.reciprocal(s, approx=True)
        inv = inv * (2.0 - s * inv)
        out_ref[...] = e * inv   # lane-dense (batch, hpad) unmasked store

    return kernel


def pack_params(params, dim, hdim, label_dim):
    """Pack all 11 parameter arrays into ONE bf16 slab (done once, host side).

    Layout (sublane rows, lane width hpad=128):
      [0,           dim_pad)        w1   (zero-padded)
      [dim_pad,     dim_pad+hpad)   wm   (zero-padded)
      [dim_pad+hp,  dim_pad+2hp)    wl   (zero-padded)
      [dim_pad+2hp, dim_pad+2hp+16) b1,g1,be1,bm,gm,bem,bl(NEG_BIG pad),zeros
    """
    dim_pad = _round_up(dim, 16)                       # bf16 sublane alignment
    hpad = _round_up(max(hdim, label_dim), LANES)

    def pad2(w, rows, cols):
        r, c = w.shape
        return jnp.pad(w, ((0, rows - r), (0, cols - c)))

    def pad1(v):
        return jnp.pad(v, ((0, 0), (0, hpad - v.shape[1])))

    w1 = pad2(params["w1"], dim_pad, hpad)
    wm = pad2(params["wm"], hpad, hpad)
    wl = pad2(params["wl"], hpad, hpad)

    bl_pad = jnp.concatenate(
        [params["bl"],
         jnp.full((1, hpad - label_dim), NEG_BIG, jnp.float32)], axis=1)
    v_rows = jnp.concatenate(
        [pad1(params["b1"]), pad1(params["g1"]), pad1(params["be1"]),
         pad1(params["bm"]), pad1(params["gm"]), pad1(params["bem"]),
         bl_pad, jnp.zeros((9, hpad), jnp.float32)], axis=0)   # pad to 16 rows

    slab = jnp.concatenate([w1, wm, wl, v_rows], axis=0).astype(jnp.bfloat16)
    return slab


def _offsets(dim, hdim, label_dim):
    dim_pad = _round_up(dim, 16)
    hpad = _round_up(max(hdim, label_dim), LANES)
    off_wm = dim_pad
    off_wl = dim_pad + hpad
    off_v = dim_pad + 2 * hpad
    rows = off_v + 16
    return dim_pad, hpad, off_wm, off_wl, off_v, rows


@functools.partial(jax.jit,
                   static_argnames=("dim", "hdim", "label_dim", "n_layer"))
def critic_or_baseline_forward(x, slab, *, dim, hdim, label_dim, n_layer):
    """Single-batch forward. x: (batch, dim) -> (batch, label_dim) float32."""
    batch = x.shape[0]
    dim_pad, hpad, off_wm, off_wl, off_v, _ = _offsets(dim, hdim, label_dim)
    kern = _make_kernel(batch, dim, dim_pad, hpad, n_layer - 2,
                        off_wm, off_wl, off_v)
    # Whole problem fits trivially in VMEM: no grid, full-array VMEM blocks,
    # only 2 input operands -> 2 input DMAs.
    out = pl.pallas_call(
        kern,
        out_shape=jax.ShapeDtypeStruct((batch, hpad), jnp.float32),
        in_specs=[pl.BlockSpec(memory_space=pltpu.MemorySpace.VMEM)] * 2,
        out_specs=pl.BlockSpec(memory_space=pltpu.MemorySpace.VMEM),
    )(x, slab)
    return out[:, :label_dim]


@functools.partial(jax.jit,
                   static_argnames=("dim", "hdim", "label_dim", "n_layer"))
def critic_or_baseline_forward_batched(xs, slab, *, dim, hdim, label_dim,
                                       n_layer):
    """Many independent batches in one launch.

    xs: (n_instances, batch, dim).  Each instance is its own BatchNorm batch
    (statistics are per grid step), so module semantics are preserved.
    Launch/DMA overhead is amortized over the grid; the param slab stays
    resident in VMEM (index_map returns block 0); "parallel" lets multi-TC
    chips (v7x) shard instances across cores.
    """
    n_inst, batch, _ = xs.shape
    dim_pad, hpad, off_wm, off_wl, off_v, rows = _offsets(dim, hdim, label_dim)
    kern = _make_kernel(batch, dim, dim_pad, hpad, n_layer - 2,
                        off_wm, off_wl, off_v)
    out = pl.pallas_call(
        kern,
        grid=(n_inst,),
        out_shape=jax.ShapeDtypeStruct((n_inst, batch, hpad), jnp.float32),
        in_specs=[
            pl.BlockSpec((None, batch, xs.shape[2]), lambda i: (i, 0, 0)),
            pl.BlockSpec((rows, hpad), lambda i: (0, 0)),   # params resident
        ],
        out_specs=pl.BlockSpec((None, batch, hpad), lambda i: (i, 0, 0)),
        compiler_params=pltpu.CompilerParams(
            dimension_semantics=("parallel",)),
    )(xs, slab)
    return out[:, :, :label_dim]


def init_params(key, dim, critic_h_dim, label_dim):
    """Deterministic synthetic parameters (PyTorch-style uniform init)."""
    k1, k2, k3 = jax.random.split(key, 3)

    def linear_init(k, fan_in, fan_out):
        bound = 1.0 / (fan_in ** 0.5)
        kw, kb = jax.random.split(k)
        w = jax.random.uniform(kw, (fan_in, fan_out), jnp.float32, -bound, bound)
        b = jax.random.uniform(kb, (1, fan_out), jnp.float32, -bound, bound)
        return w, b

    w1, b1 = linear_init(k1, dim, critic_h_dim)
    wm, bm = linear_init(k2, critic_h_dim, critic_h_dim)   # shared mid block
    wl, bl = linear_init(k3, critic_h_dim, label_dim)

    return dict(
        w1=w1, b1=b1,
        g1=jnp.ones((1, critic_h_dim), jnp.float32),
        be1=jnp.zeros((1, critic_h_dim), jnp.float32),
        wm=wm, bm=bm,
        gm=jnp.ones((1, critic_h_dim), jnp.float32),
        bem=jnp.zeros((1, critic_h_dim), jnp.float32),
        wl=wl, bl=bl,
    )


def reference_forward(x, params, n_layer):
    """Pure-JAX f32 reference (same math as the PyTorch module)."""
    def bn(h, g, b):
        mean = jnp.mean(h, axis=0, keepdims=True)
        var = jnp.mean((h - mean) ** 2, axis=0, keepdims=True)
        return g * (h - mean) / jnp.sqrt(var + BN_EPS) + b

    h = bn(jnp.maximum(x @ params["w1"] + params["b1"], 0.0),
           params["g1"], params["be1"])
    for _ in range(n_layer - 2):
        h = bn(jnp.maximum(h @ params["wm"] + params["bm"], 0.0),
               params["gm"], params["bem"])
    logits = h @ params["wl"] + params["bl"]
    return jax.nn.softmax(logits, axis=1)


if __name__ == "__main__":
    # model_parameters (small, consistent with the module):
    batch = 8
    dim = 16              # 'dim'
    critic_h_dim = 32     # 'critic_h_dim'
    label_dim = 4         # 'label_dim'
    n_layer = 4           # 'predictor_n_layer' -> 2 shared mid applications
    # 'activation' == 'relu'

    key = jax.random.PRNGKey(0)
    kx, kp, kxs = jax.random.split(key, 3)
    x = jax.random.normal(kx, (batch, dim), jnp.float32)
    params = init_params(kp, dim, critic_h_dim, label_dim)
    slab = pack_params(params, dim, critic_h_dim, label_dim)

    # Tolerance covers bf16 weight/activation rounding through 3 matmuls + BN.
    TOL = 3e-2

    # --- single-call path (no grid) ---------------------------------------
    y_hat = critic_or_baseline_forward(
        x, slab, dim=dim, hdim=critic_h_dim, label_dim=label_dim,
        n_layer=n_layer)
    y_hat = jax.block_until_ready(y_hat)

    assert y_hat.shape == (batch, label_dim)
    assert bool(jnp.all(jnp.isfinite(y_hat)))
    # softmax rows must sum to 1 (exp/sum/reciprocal stay f32)
    assert bool(jnp.all(jnp.abs(jnp.sum(y_hat, axis=1) - 1.0) < 1e-5))
    y_ref = reference_forward(x, params, n_layer)
    assert bool(jnp.all(jnp.abs(y_hat - y_ref) < TOL))

    # --- batched path (grid over independent batches, params resident) -----
    n_inst = 3
    xs = jax.random.normal(kxs, (n_inst, batch, dim), jnp.float32)
    ys = critic_or_baseline_forward_batched(
        xs, slab, dim=dim, hdim=critic_h_dim, label_dim=label_dim,
        n_layer=n_layer)
    ys = jax.block_until_ready(ys)

    assert ys.shape == (n_inst, batch, label_dim)
    assert bool(jnp.all(jnp.isfinite(ys)))
    assert bool(jnp.all(jnp.abs(jnp.sum(ys, axis=2) - 1.0) < 1e-5))
    for i in range(n_inst):
        yr = reference_forward(xs[i], params, n_layer)
        assert bool(jnp.all(jnp.abs(ys[i] - yr) < TOL))

    print("KERNEL_OK")
</pallas_src>

<mosaic_0001>
module attributes {stable_mosaic.version = 11 : i64} {
  func.func @kernel(%arg0: memref<8x16xf32, #tpu.memory_space<vmem>>, %arg1: memref<288x128xbf16, #tpu.memory_space<vmem>>, %arg2: memref<8x128xf32, #tpu.memory_space<vmem>>) attributes {dimension_semantics = [], scalar_prefetch = 0 : i64, scratch_operands = 0 : i64, tpu.core_type = #tpu.core_type<tc>} {
    %c0 = arith.constant 0 : index
    %c0_0 = arith.constant 0 : index
    %0 = vector.load %arg0[%c0, %c0_0] : memref<8x16xf32, #tpu.memory_space<vmem>>, vector<8x16xf32>
    %1 = arith.truncf %0 : vector<8x16xf32> to vector<8x16xbf16>
    %c0_1 = arith.constant 0 : index
    %c0_2 = arith.constant 0 : index
    %2 = vector.load %arg1[%c0_1, %c0_2] : memref<288x128xbf16, #tpu.memory_space<vmem>>, vector<16x128xbf16>
    %c16 = arith.constant 16 : index
    %c0_3 = arith.constant 0 : index
    %3 = vector.load %arg1[%c16, %c0_3] : memref<288x128xbf16, #tpu.memory_space<vmem>>, vector<128x128xbf16>
    %c144 = arith.constant 144 : index
    %c0_4 = arith.constant 0 : index
    %4 = vector.load %arg1[%c144, %c0_4] : memref<288x128xbf16, #tpu.memory_space<vmem>>, vector<128x128xbf16>
    %c272 = arith.constant 272 : index
    %c0_5 = arith.constant 0 : index
    %5 = vector.load %arg1[%c272, %c0_5] : memref<288x128xbf16, #tpu.memory_space<vmem>>, vector<16x128xbf16>
    %6 = arith.extf %5 : vector<16x128xbf16> to vector<16x128xf32>
    %7 = vector.extract_strided_slice %6 {offsets = [0, 0], sizes = [1, 128], strides = [1, 1]} : vector<16x128xf32> to vector<1x128xf32>
    %8 = vector.extract_strided_slice %6 {offsets = [1, 0], sizes = [1, 128], strides = [1, 1]} : vector<16x128xf32> to vector<1x128xf32>
    %9 = vector.extract_strided_slice %6 {offsets = [2, 0], sizes = [1, 128], strides = [1, 1]} : vector<16x128xf32> to vector<1x128xf32>
    %10 = vector.extract_strided_slice %6 {offsets = [3, 0], sizes = [1, 128], strides = [1, 1]} : vector<16x128xf32> to vector<1x128xf32>
    %11 = vector.extract_strided_slice %6 {offsets = [4, 0], sizes = [1, 128], strides = [1, 1]} : vector<16x128xf32> to vector<1x128xf32>
    %12 = vector.extract_strided_slice %6 {offsets = [5, 0], sizes = [1, 128], strides = [1, 1]} : vector<16x128xf32> to vector<1x128xf32>
    %13 = vector.extract_strided_slice %6 {offsets = [6, 0], sizes = [1, 128], strides = [1, 1]} : vector<16x128xf32> to vector<1x128xf32>
    %cst = arith.constant dense<0.000000e+00> : vector<8x128xf32>
    %14 = tpu.matmul %1, %2, %cst {dimension_numbers = #tpu.dot_dimension_numbers<[1], [0], [0], [1], [0, 0, 1, 1], [], []>} : vector<8x16xbf16>, vector<16x128xbf16>, vector<8x128xf32> -> vector<8x128xf32>
    %15 = vector.broadcast %7 : vector<1x128xf32> to vector<8x128xf32>
    %16 = arith.addf %14, %15 : vector<8x128xf32>
    %cst_6 = arith.constant 0.000000e+00 : f32
    %17 = vector.broadcast %cst_6 : f32 to vector<8x128xf32>
    %18 = arith.maximumf %16, %17 : vector<8x128xf32>
    %cst_7 = arith.constant dense<0.000000e+00> : vector<128xf32>
    %19 = vector.multi_reduction <add>, %18, %cst_7 [0] : vector<8x128xf32> to vector<128xf32>
    %20 = vector.shape_cast %19 : vector<128xf32> to vector<1x128xf32>
    %21 = arith.mulf %18, %18 : vector<8x128xf32>
    %cst_8 = arith.constant dense<0.000000e+00> : vector<128xf32>
    %22 = vector.multi_reduction <add>, %21, %cst_8 [0] : vector<8x128xf32> to vector<128xf32>
    %23 = vector.shape_cast %22 : vector<128xf32> to vector<1x128xf32>
    %cst_9 = arith.constant 1.250000e-01 : f32
    %24 = vector.broadcast %cst_9 : f32 to vector<1x128xf32>
    %25 = arith.mulf %20, %24 : vector<1x128xf32>
    %cst_10 = arith.constant 1.250000e-01 : f32
    %26 = vector.broadcast %cst_10 : f32 to vector<1x128xf32>
    %27 = arith.mulf %23, %26 : vector<1x128xf32>
    %28 = arith.mulf %25, %25 : vector<1x128xf32>
    %29 = arith.subf %27, %28 : vector<1x128xf32>
    %cst_11 = arith.constant 0.000000e+00 : f32
    %30 = vector.broadcast %cst_11 : f32 to vector<1x128xf32>
    %31 = arith.maximumf %29, %30 : vector<1x128xf32>
    %cst_12 = arith.constant 9.99999974E-6 : f32
    %32 = vector.broadcast %cst_12 : f32 to vector<1x128xf32>
    %33 = arith.addf %31, %32 : vector<1x128xf32>
    %34 = math.rsqrt %33 : vector<1x128xf32>
    %35 = arith.mulf %8, %34 : vector<1x128xf32>
    %36 = vector.broadcast %35 : vector<1x128xf32> to vector<8x128xf32>
    %37 = arith.mulf %36, %18 : vector<8x128xf32>
    %38 = arith.mulf %35, %25 : vector<1x128xf32>
    %39 = arith.subf %9, %38 : vector<1x128xf32>
    %40 = vector.broadcast %39 : vector<1x128xf32> to vector<8x128xf32>
    %41 = arith.addf %37, %40 : vector<8x128xf32>
    %42 = arith.truncf %41 : vector<8x128xf32> to vector<8x128xbf16>
    %cst_13 = arith.constant dense<0.000000e+00> : vector<8x128xf32>
    %43 = tpu.matmul %42, %3, %cst_13 {dimension_numbers = #tpu.dot_dimension_numbers<[1], [0], [0], [1], [0, 0, 1, 1], [], []>} : vector<8x128xbf16>, vector<128x128xbf16>, vector<8x128xf32> -> vector<8x128xf32>
    %44 = vector.broadcast %10 : vector<1x128xf32> to vector<8x128xf32>
    %45 = arith.addf %43, %44 : vector<8x128xf32>
    %cst_14 = arith.constant 0.000000e+00 : f32
    %46 = vector.broadcast %cst_14 : f32 to vector<8x128xf32>
    %47 = arith.maximumf %45, %46 : vector<8x128xf32>
    %cst_15 = arith.constant dense<0.000000e+00> : vector<128xf32>
    %48 = vector.multi_reduction <add>, %47, %cst_15 [0] : vector<8x128xf32> to vector<128xf32>
    %49 = vector.shape_cast %48 : vector<128xf32> to vector<1x128xf32>
    %50 = arith.mulf %47, %47 : vector<8x128xf32>
    %cst_16 = arith.constant dense<0.000000e+00> : vector<128xf32>
    %51 = vector.multi_reduction <add>, %50, %cst_16 [0] : vector<8x128xf32> to vector<128xf32>
    %52 = vector.shape_cast %51 : vector<128xf32> to vector<1x128xf32>
    %cst_17 = arith.constant 1.250000e-01 : f32
    %53 = vector.broadcast %cst_17 : f32 to vector<1x128xf32>
    %54 = arith.mulf %49, %53 : vector<1x128xf32>
    %cst_18 = arith.constant 1.250000e-01 : f32
    %55 = vector.broadcast %cst_18 : f32 to vector<1x128xf32>
    %56 = arith.mulf %52, %55 : vector<1x128xf32>
    %57 = arith.mulf %54, %54 : vector<1x128xf32>
    %58 = arith.subf %56, %57 : vector<1x128xf32>
    %cst_19 = arith.constant 0.000000e+00 : f32
    %59 = vector.broadcast %cst_19 : f32 to vector<1x128xf32>
    %60 = arith.maximumf %58, %59 : vector<1x128xf32>
    %cst_20 = arith.constant 9.99999974E-6 : f32
    %61 = vector.broadcast %cst_20 : f32 to vector<1x128xf32>
    %62 = arith.addf %60, %61 : vector<1x128xf32>
    %63 = math.rsqrt %62 : vector<1x128xf32>
    %64 = arith.mulf %11, %63 : vector<1x128xf32>
    %65 = vector.broadcast %64 : vector<1x128xf32> to vector<8x128xf32>
    %66 = arith.mulf %65, %47 : vector<8x128xf32>
    %67 = arith.mulf %64, %54 : vector<1x128xf32>
    %68 = arith.subf %12, %67 : vector<1x128xf32>
    %69 = vector.broadcast %68 : vector<1x128xf32> to vector<8x128xf32>
    %70 = arith.addf %66, %69 : vector<8x128xf32>
    %71 = arith.truncf %70 : vector<8x128xf32> to vector<8x128xbf16>
    %cst_21 = arith.constant dense<0.000000e+00> : vector<8x128xf32>
    %72 = tpu.matmul %71, %3, %cst_21 {dimension_numbers = #tpu.dot_dimension_numbers<[1], [0], [0], [1], [0, 0, 1, 1], [], []>} : vector<8x128xbf16>, vector<128x128xbf16>, vector<8x128xf32> -> vector<8x128xf32>
    %73 = vector.broadcast %10 : vector<1x128xf32> to vector<8x128xf32>
    %74 = arith.addf %72, %73 : vector<8x128xf32>
    %cst_22 = arith.constant 0.000000e+00 : f32
    %75 = vector.broadcast %cst_22 : f32 to vector<8x128xf32>
    %76 = arith.maximumf %74, %75 : vector<8x128xf32>
    %cst_23 = arith.constant dense<0.000000e+00> : vector<128xf32>
    %77 = vector.multi_reduction <add>, %76, %cst_23 [0] : vector<8x128xf32> to vector<128xf32>
    %78 = vector.shape_cast %77 : vector<128xf32> to vector<1x128xf32>
    %79 = arith.mulf %76, %76 : vector<8x128xf32>
    %cst_24 = arith.constant dense<0.000000e+00> : vector<128xf32>
    %80 = vector.multi_reduction <add>, %79, %cst_24 [0] : vector<8x128xf32> to vector<128xf32>
    %81 = vector.shape_cast %80 : vector<128xf32> to vector<1x128xf32>
    %cst_25 = arith.constant 1.250000e-01 : f32
    %82 = vector.broadcast %cst_25 : f32 to vector<1x128xf32>
    %83 = arith.mulf %78, %82 : vector<1x128xf32>
    %cst_26 = arith.constant 1.250000e-01 : f32
    %84 = vector.broadcast %cst_26 : f32 to vector<1x128xf32>
    %85 = arith.mulf %81, %84 : vector<1x128xf32>
    %86 = arith.mulf %83, %83 : vector<1x128xf32>
    %87 = arith.subf %85, %86 : vector<1x128xf32>
    %cst_27 = arith.constant 0.000000e+00 : f32
    %88 = vector.broadcast %cst_27 : f32 to vector<1x128xf32>
    %89 = arith.maximumf %87, %88 : vector<1x128xf32>
    %cst_28 = arith.constant 9.99999974E-6 : f32
    %90 = vector.broadcast %cst_28 : f32 to vector<1x128xf32>
    %91 = arith.addf %89, %90 : vector<1x128xf32>
    %92 = math.rsqrt %91 : vector<1x128xf32>
    %93 = arith.mulf %11, %92 : vector<1x128xf32>
    %94 = vector.broadcast %93 : vector<1x128xf32> to vector<8x128xf32>
    %95 = arith.mulf %94, %76 : vector<8x128xf32>
    %96 = arith.mulf %93, %83 : vector<1x128xf32>
    %97 = arith.subf %12, %96 : vector<1x128xf32>
    %98 = vector.broadcast %97 : vector<1x128xf32> to vector<8x128xf32>
    %99 = arith.addf %95, %98 : vector<8x128xf32>
    %100 = arith.truncf %99 : vector<8x128xf32> to vector<8x128xbf16>
    %cst_29 = arith.constant dense<0.000000e+00> : vector<8x128xf32>
    %101 = tpu.matmul %100, %4, %cst_29 {dimension_numbers = #tpu.dot_dimension_numbers<[1], [0], [0], [1], [0, 0, 1, 1], [], []>} : vector<8x128xbf16>, vector<128x128xbf16>, vector<8x128xf32> -> vector<8x128xf32>
    %102 = vector.broadcast %13 : vector<1x128xf32> to vector<8x128xf32>
    %103 = arith.addf %101, %102 : vector<8x128xf32>
    %cst_30 = arith.constant dense<0xFF800000> : vector<8xf32>
    %104 = vector.multi_reduction <maximumf>, %103, %cst_30 [1] : vector<8x128xf32> to vector<8xf32>
    %105 = vector.shape_cast %104 : vector<8xf32> to vector<8x1xf32>
    %106 = vector.broadcast %105 : vector<8x1xf32> to vector<8x128xf32>
    %107 = arith.subf %103, %106 : vector<8x128xf32>
    %108 = math.exp %107 : vector<8x128xf32>
    %cst_31 = arith.constant dense<0.000000e+00> : vector<8xf32>
    %109 = vector.multi_reduction <add>, %108, %cst_31 [1] : vector<8x128xf32> to vector<8xf32>
    %110 = vector.shape_cast %109 : vector<8xf32> to vector<8x1xf32>
    %111 = tpu.reciprocal %110 {approx = true} : vector<8x1xf32> -> vector<8x1xf32>
    %112 = arith.mulf %110, %111 : vector<8x1xf32>
    %cst_32 = arith.constant 2.000000e+00 : f32
    %113 = vector.broadcast %cst_32 : f32 to vector<8x1xf32>
    %114 = arith.subf %113, %112 : vector<8x1xf32>
    %115 = arith.mulf %111, %114 : vector<8x1xf32>
    %116 = vector.broadcast %115 : vector<8x1xf32> to vector<8x128xf32>
    %117 = arith.mulf %108, %116 : vector<8x128xf32>
    %c0_33 = arith.constant 0 : index
    %c0_34 = arith.constant 0 : index
    %118 = vector.load %arg2[%c0_33, %c0_34] : memref<8x128xf32, #tpu.memory_space<vmem>>, vector<8x128xf32>
    tpu.vector_store %arg2[%c0_33, %c0_34], %117 {strides = array<i32>} : memref<8x128xf32, #tpu.memory_space<vmem>>, vector<8x128xf32>,
    return
  }
}

</mosaic_0001>

<bundles_post_ra>
// kernel: critic_or_baseline_forward.1
= control target key start
LH: loop header
LB: loop body
LE: loop exit
PB: predicated region body
PF: predicated region fallthrough
CT: control target
= control target key end

     0   :  { %7 = vsyncpa [#allocation3], 0  ;;  %s772_s0 = inlined_call_operand.hbm [shape: f32[8,16], index: 0, kind: input, shape index: {}]   ;;  %s773_s1 = inlined_call_operand.hbm [shape: bf16[288,128], index: 1, kind: input, shape index: {}]   ;;  %s774_s2 = inlined_call_operand.vmem [shape: f32[8,128], index: 2, kind: output, shape index: {}]  }
   0x1   :  { %8 = vsyncpa [#allocation5], 0  ;;  %s677_s9 = smov [#allocation2]   ;;  %s678_s11 = smov [#allocation4]  }
   0x2   :  { %s15_s10 = sshll.u32 %s677_s9, 4  ;;  %s24_s12 = sshll.u32 %s678_s11, 4  ;;  %s16_s10 = int_to_ptr.vmem [resolvable:$true] %s15_s10  ;;  %s25_s12 = int_to_ptr.vmem [resolvable:$true] %s24_s12 }
   0x3   :  { %s641_s13 = scalar_lea.vmem %s16_s10, 128  ;;  %p646_p1 = scmp.lt.s32.totalorder %s16_s10, %s16_s10 }
   0x4   :  { %p642_p0 = scmp.ne.s32.totalorder %s16_s10, %s641_s13  ;;  %p647_p2 = scmp.lt.s32.totalorder %s641_s13, %s641_s13 }
   0x6   :  { %p648_p3 = por %p647_p2, %p646_p1 }
   0x8   :  { %p649_p4 = pnand %p648_p3, %p642_p0 }
   0xa   :  { %652 = shalt.err (!%p649_p4)
}
   0xb   :  { %18 = dma.hbm_to_vmem [thread:$0]  %s772_s0, 128, %s16_s10, [#allocation3]  }
   0xc   :  { %s661_s16 = scalar_lea.vmem %s25_s12, 2304  ;;  %p666_p6 = scmp.lt.s32.totalorder %s25_s12, %s25_s12 }
   0xd   :  { %p662_p5 = scmp.ne.s32.totalorder %s25_s12, %s661_s16  ;;  %p667_p7 = scmp.lt.s32.totalorder %s661_s16, %s661_s16 }
   0xf   :  { %p668_p8 = por %p667_p7, %p666_p6 }
  0x11   :  { %p669_p9 = pnand %p668_p8, %p662_p5 }
  0x13   :  { %672 = shalt.err (!%p669_p9)
}
  0x14   :  { %s679_s17 = smov 64   ;;  %s680_s18 = smov 4  }
  0x15   :  { %30 = dma.hbm_to_vmem [thread:$0]  %s773_s1, 2304, %s25_s12, [#allocation5], %s679_s17, %s679_s17, %s680_s18  }
  0x16   :  { %673 = dma.done.wait [#allocation3], 128  }
  0x17   :  { %674 = vsyncadd [#allocation3], 4294967168 }
  0x18   :  { %675 = dma.done.wait [#allocation5], 2304  }
  0x19   :  { %676 = vsyncadd [#allocation5], 4294964992  ;;  %v681_v0 = vmov 0.0   ;;  %vm682_vm0 = vmmov 0   ;;  %v606_v1 = vld [vmem:[#allocation4] sm:$0xff]   ;;  %v38_v2 = vld [vmem:[#allocation2] sm:$0xff]  ;;  %v76_v12 = vlaneseq }
  0x1a   :  { %534 = vmatprep.subr.bf16.mxu0 %v681_v0  ;;  %536 = vmatprep.mubr.msk.bf16.mxu0 %vm682_vm0, %v681_v0  ;;  %vm86_vm1 = vcmask 130048   ;;  %v39_v3 = vpack.c.bf16 %v38_v2, %v38_v2  ;;  %v607_v4 = vld [vmem:[#allocation4 + $0x40] sm:$0xff]   ;;  %v608_v5 = vld [vmem:[#allocation4 + $0x38] sm:$0xff]   ;;  %v609_v6 = vld [vmem:[#allocation4 + $0x30] sm:$0xff]  }
  0x1b   :  { %540 = vmatprep.subr.bf16.mxu1 %v681_v0  ;;  %556 = vmatprep.mubr.msk.bf16.mxu1 %vm682_vm0, %v681_v0  ;;  %v610_v7 = vld [vmem:[#allocation4 + $0x28] sm:$0xff]   ;;  %v611_v8 = vld [vmem:[#allocation4 + $0x20] sm:$0xff]   ;;  %v612_v9 = vld [vmem:[#allocation4 + $0x18] sm:$0xff]   ;;  %v728_v13 = vshrl.u32 %v76_v12, 7 }
  0x1c   :  { %535 = vmatpush3.bf16.msra.mxu0 %v606_v1  ;;  %541 = vmatpush3.bf16.msra.mxu1 %v607_v4  ;;  %v613_v10 = vld [vmem:[#allocation4 + $0x10] sm:$0xff]   ;;  %v614_v11 = vld [vmem:[#allocation4 + $0x8] sm:$0xff]  }
  0x1d   :  { %560 = vmatprep.subr.bf16.mxu0 %v681_v0  ;;  %542 = vmatprep.subr.bf16.mxu1 %v681_v0  ;;  %v74_v14 = vld [vmem:[#allocation4 + $0x88] sm:$0xf]  ;;  %v78_v16 = vsub.s32 0, %v728_v13  ;;  %v154_v45 = vsub.s32 1, %v728_v13  ;;  %v164_v49 = vsub.s32 2, %v728_v13  ;;  %v170_v55 = vsub.s32 3, %v728_v13 }
  0x1e   :  { %v730_v15 = vunpack.c.l.bf16 %v74_v14 }
  0x1f   :  { %537 = vmatmul.mubr.msk.bf16.vlgmr.msra.gmra.mxu0 %vm86_vm1, %v39_v3 }
  0x20   :  { %576 = vmatprep.mubr.msk.bf16.mxu0 %vm682_vm0, %v681_v0  ;;  %561 = vmatpush3.bf16.msra.mxu0 %v607_v4  ;;  %v79_v17 = vrot.slane %v730_v15, %v78_v16  ;;  %v742_v56 = vrot.slane %v730_v15, %v170_v55 }
  0x21   :  { %562 = vmatprep.subr.bf16.mxu0 %v681_v0  ;;  %543 = vmatpush3.bf16.msra.mxu1 %v608_v5 }
  0x22   :  { %544 = vmatprep.subr.bf16.mxu1 %v681_v0 }
  0x24   :  { %563 = vmatpush3.bf16.msra.mxu0 %v608_v5 }
  0x25   :  { %564 = vmatprep.subr.bf16.mxu0 %v681_v0  ;;  %545 = vmatpush3.bf16.msra.mxu1 %v609_v6 }
  0x26   :  { %546 = vmatprep.subr.bf16.mxu1 %v681_v0 }
  0x28   :  { %565 = vmatpush3.bf16.msra.mxu0 %v609_v6 }
  0x29   :  { %566 = vmatprep.subr.bf16.mxu0 %v681_v0  ;;  %547 = vmatpush3.bf16.msra.mxu1 %v610_v7 }
  0x2a   :  { %548 = vmatprep.subr.bf16.mxu1 %v681_v0 }
  0x2c   :  { %567 = vmatpush3.bf16.msra.mxu0 %v610_v7 }
  0x2d   :  { %568 = vmatprep.subr.bf16.mxu0 %v681_v0  ;;  %549 = vmatpush3.bf16.msra.mxu1 %v611_v8 }
  0x2e   :  { %550 = vmatprep.subr.bf16.mxu1 %v681_v0 }
  0x30   :  { %569 = vmatpush3.bf16.msra.mxu0 %v611_v8 }
  0x31   :  { %570 = vmatprep.subr.bf16.mxu0 %v681_v0  ;;  %551 = vmatpush3.bf16.msra.mxu1 %v612_v9 }
  0x32   :  { %552 = vmatprep.subr.bf16.mxu1 %v681_v0 }
  0x34   :  { %571 = vmatpush3.bf16.msra.mxu0 %v612_v9 }
  0x35   :  { %572 = vmatprep.subr.bf16.mxu0 %v681_v0  ;;  %553 = vmatpush3.bf16.msra.mxu1 %v613_v10 }
  0x36   :  { %554 = vmatprep.subr.bf16.mxu1 %v681_v0 }
  0x38   :  { %573 = vmatpush3.bf16.msra.mxu0 %v613_v10 }
  0x39   :  { %574 = vmatprep.subr.bf16.mxu0 %v681_v0  ;;  %555 = vmatpush3.bf16.msra.mxu1 %v614_v11 }
  0x3a   :  { %580 = vmatprep.subr.bf16.mxu1 %v681_v0 }
  0x3c   :  { %575 = vmatpush3.bf16.msra.mxu0 %v614_v11 }
  0xdf   :  { %v124_v18 = vpop.f32.mrf.mxu0 }
  0xe0   :  { %v125_v19 = vadd.f32 %v124_v18, %v79_v17 }
  0xe1   :  { %v538_v20 = vpop.f32.mrf.mxu0 }
  0xe2   :  { %v130_v21 = vmax.f32 %v125_v19, 0.0 }
  0xe3   :  { %v127_v22 = vpop.f32.mrf.mxu0 }
  0xe4   :  { %v131_v23 = vrot.slane %v130_v21, 4  ;;  %v137_v24 = vmul.f32 %v130_v21, %v130_v21 }
  0xe5   :  { %v539_v25 = vpop.f32.mrf.mxu0 }
  0xe6   :  { %v132_v26 = vadd.f32 %v131_v23, %v130_v21  ;;  %v138_v27 = vrot.slane %v137_v24, 4  ;;  %v284_v23 = vsub.s32 4, %v728_v13 }
  0xe8   :  { %v133_v28 = vrot.slane %v132_v26, 2  ;;  %v139_v29 = vadd.f32 %v138_v27, %v137_v24  ;;  %v294_v27 = vsub.s32 5, %v728_v13 }
  0xea   :  { %v134_v30 = vadd.f32 %v133_v28, %v132_v26  ;;  %v140_v31 = vrot.slane %v139_v29, 2 }
  0xec   :  { %v135_v32 = vrot.slane %v134_v30, 1  ;;  %v141_v33 = vadd.f32 %v140_v31, %v139_v29 }
  0xee   :  { %v136_v34 = vadd.f32 %v135_v32, %v134_v30  ;;  %v142_v35 = vrot.slane %v141_v33, 1 }
  0xf0   :  { %v143_v36 = vadd.f32 %v142_v35, %v141_v33  ;;  %v144_v37 = vmul.f32 0.125, %v136_v34  ;;  %v615_v33 = vld [vmem:[#allocation4 + $0x80] sm:$0xff]   ;;  %v616_v34 = vld [vmem:[#allocation4 + $0x78] sm:$0xff]   ;;  %v617_v35 = vld [vmem:[#allocation4 + $0x70] sm:$0xff]  }
  0xf2   :  { %v145_v38 = vmul.f32 0.125, %v143_v36  ;;  %v146_v39 = vmul.f32 %v144_v37, %v144_v37  ;;  %v618_v36 = vld [vmem:[#allocation4 + $0x68] sm:$0xff]  }
  0xf4   :  { %v147_v40 = vsub.f32 %v145_v38, %v146_v39  ;;  %v620_v38 = vld [vmem:[#allocation4 + $0x58] sm:$0xff]   ;;  %v621_v39 = vld [vmem:[#allocation4 + $0x50] sm:$0xff]  }
  0xf6   :  { %v148_v41 = vmax.f32 %v147_v40, 0.0  ;;  %v622_v40 = vld [vmem:[#allocation4 + $0x48] sm:$0xff]  }
  0xf8   :  { %v149_v42 = vadd.f32 1e-05, %v148_v41 }
  0xfa   :  { %623 = vrsqrt.f32 %v149_v42 }
 0x107   :  { %v624_v43 = vpop.eup %623 }
 0x108   :  { %v151_v44 = vmul.f32 %v624_v43, %v730_v15 }
 0x10a   :  { %v157_v46 = vmul.f32 %v151_v44, %v144_v37  ;;  %v155_v47 = vrot.slane %v151_v44, %v154_v45  ;;  %v619_v37 = vld [vmem:[#allocation4 + $0x60] sm:$0xff]  }
 0x10c   :  { %v159_v48 = vrot.slane %v157_v46, 7  ;;  %v156_v51 = vmul.f32 %v155_v47, %v130_v21 }
 0x10e   :  { %v161_v50 = vsub.f32 %v730_v15, %v159_v48 }
 0x110   :  { %v165_v52 = vrot.slane %v161_v50, %v164_v49 }
 0x112   :  { %v166_v53 = vadd.f32 %v165_v52, %v156_v51 }
 0x114   :  { %v167_v54 = vpack.c.bf16 %v166_v53, %v166_v53 }
 0x116   :  { %557 = vmatmul.mubr.bf16.vlgmr.msra.gmra.mxu1 %v167_v54 }
 0x117   :  { %596 = vmatprep.mubr.msk.bf16.mxu1 %vm682_vm0, %v681_v0  ;;  %581 = vmatpush3.bf16.msra.mxu1 %v615_v33 }
 0x118   :  { %582 = vmatprep.subr.bf16.mxu1 %v681_v0 }
 0x11b   :  { %583 = vmatpush3.bf16.msra.mxu1 %v616_v34 }
 0x11c   :  { %584 = vmatprep.subr.bf16.mxu1 %v681_v0 }
 0x11f   :  { %585 = vmatpush3.bf16.msra.mxu1 %v617_v35 }
 0x120   :  { %586 = vmatprep.subr.bf16.mxu1 %v681_v0 }
 0x123   :  { %587 = vmatpush3.bf16.msra.mxu1 %v618_v36 }
 0x124   :  { %588 = vmatprep.subr.bf16.mxu1 %v681_v0 }
 0x127   :  { %589 = vmatpush3.bf16.msra.mxu1 %v619_v37 }
 0x128   :  { %590 = vmatprep.subr.bf16.mxu1 %v681_v0 }
 0x12b   :  { %591 = vmatpush3.bf16.msra.mxu1 %v620_v38 }
 0x12c   :  { %592 = vmatprep.subr.bf16.mxu1 %v681_v0 }
 0x12f   :  { %593 = vmatpush3.bf16.msra.mxu1 %v621_v39 }
 0x130   :  { %594 = vmatprep.subr.bf16.mxu1 %v681_v0 }
 0x133   :  { %595 = vmatpush3.bf16.msra.mxu1 %v622_v40 }
 0x1d6   :  { %v254_v57 = vpop.f32.mrf.mxu1 }
 0x1d7   :  { %v255_v58 = vadd.f32 %v254_v57, %v742_v56 }
 0x1d8   :  { %v558_v59 = vpop.f32.mrf.mxu1 }
 0x1d9   :  { %v260_v60 = vmax.f32 %v255_v58, 0.0 }
 0x1da   :  { %v257_v61 = vpop.f32.mrf.mxu1 }
 0x1db   :  { %v261_v62 = vrot.slane %v260_v60, 4  ;;  %v267_v63 = vmul.f32 %v260_v60, %v260_v60 }
 0x1dc   :  { %v559_v1 = vpop.f32.mrf.mxu1 }
 0x1dd   :  { %v262_v2 = vadd.f32 %v261_v62, %v260_v60  ;;  %v268_v3 = vrot.slane %v267_v63, 4 }
 0x1df   :  { %v263_v4 = vrot.slane %v262_v2, 2  ;;  %v269_v5 = vadd.f32 %v268_v3, %v267_v63 }
 0x1e1   :  { %v264_v6 = vadd.f32 %v263_v4, %v262_v2  ;;  %v270_v7 = vrot.slane %v269_v5, 2 }
 0x1e3   :  { %v265_v8 = vrot.slane %v264_v6, 1  ;;  %v271_v9 = vadd.f32 %v270_v7, %v269_v5 }
 0x1e5   :  { %v266_v10 = vadd.f32 %v265_v8, %v264_v6  ;;  %v272_v11 = vrot.slane %v271_v9, 1 }
 0x1e7   :  { %v273_v12 = vadd.f32 %v272_v11, %v271_v9  ;;  %v274_v14 = vmul.f32 0.125, %v266_v10 }
 0x1e9   :  { %v275_v16 = vmul.f32 0.125, %v273_v12  ;;  %v276_v17 = vmul.f32 %v274_v14, %v274_v14  ;;  %v378_v12 = vsub.s32 6, %v728_v13 }
 0x1eb   :  { %v277_v18 = vsub.f32 %v275_v16, %v276_v17 }
 0x1ed   :  { %v278_v19 = vmax.f32 %v277_v18, 0.0 }
 0x1ef   :  { %v279_v20 = vadd.f32 1e-05, %v278_v19 }
 0x1f1   :  { %625 = vrsqrt.f32 %v279_v20 }
 0x1fe   :  { %v626_v21 = vpop.eup %625 }
 0x1ff   :  { %v281_v22 = vmul.f32 %v626_v21, %v730_v15 }
 0x201   :  { %v287_v24 = vmul.f32 %v281_v22, %v274_v14  ;;  %v285_v25 = vrot.slane %v281_v22, %v284_v23  ;;  %v379_v14 = vrot.slane %v730_v15, %v378_v12 }
 0x203   :  { %v289_v26 = vrot.slane %v287_v24, 7  ;;  %v286_v29 = vmul.f32 %v285_v25, %v260_v60 }
 0x205   :  { %v291_v28 = vsub.f32 %v730_v15, %v289_v26 }
 0x207   :  { %v295_v30 = vrot.slane %v291_v28, %v294_v27 }
 0x209   :  { %v296_v31 = vadd.f32 %v295_v30, %v286_v29 }
 0x20b   :  { %v297_v32 = vpack.c.bf16 %v296_v31, %v296_v31 }
 0x20d   :  { %577 = vmatmul.mubr.bf16.vlgmr.msra.gmra.mxu0 %v297_v32 }
 0x2cd   :  { %v332_v41 = vpop.f32.mrf.mxu0 }
 0x2ce   :  { %v333_v42 = vadd.f32 %v332_v41, %v742_v56 }
 0x2cf   :  { %v578_v43 = vpop.f32.mrf.mxu0 }
 0x2d0   :  { %v338_v44 = vmax.f32 %v333_v42, 0.0 }
 0x2d1   :  { %v335_v45 = vpop.f32.mrf.mxu0 }
 0x2d2   :  { %v339_v46 = vrot.slane %v338_v44, 4  ;;  %v345_v47 = vmul.f32 %v338_v44, %v338_v44 }
 0x2d3   :  { %v579_v48 = vpop.f32.mrf.mxu0 }
 0x2d4   :  { %v340_v49 = vadd.f32 %v339_v46, %v338_v44  ;;  %v346_v50 = vrot.slane %v345_v47, 4 }
 0x2d6   :  { %v341_v51 = vrot.slane %v340_v49, 2  ;;  %v347_v52 = vadd.f32 %v346_v50, %v345_v47 }
 0x2d8   :  { %v342_v53 = vadd.f32 %v341_v51, %v340_v49  ;;  %v348_v54 = vrot.slane %v347_v52, 2 }
 0x2da   :  { %v343_v55 = vrot.slane %v342_v53, 1  ;;  %v349_v57 = vadd.f32 %v348_v54, %v347_v52 }
 0x2dc   :  { %v344_v58 = vadd.f32 %v343_v55, %v342_v53  ;;  %v350_v0 = vrot.slane %v349_v57, 1 }
 0x2de   :  { %v351_v59 = vadd.f32 %v350_v0, %v349_v57  ;;  %v352_v60 = vmul.f32 0.125, %v344_v58 }
 0x2e0   :  { %v353_v61 = vmul.f32 0.125, %v351_v59  ;;  %v354_v56 = vmul.f32 %v352_v60, %v352_v60 }
 0x2e2   :  { %v355_v62 = vsub.f32 %v353_v61, %v354_v56 }
 0x2e4   :  { %v356_v63 = vmax.f32 %v355_v62, 0.0 }
 0x2e6   :  { %v357_v1 = vadd.f32 1e-05, %v356_v63 }
 0x2e8   :  { %627 = vrsqrt.f32 %v357_v1 }
 0x2f5   :  { %v628_v2 = vpop.eup %627 }
 0x2f6   :  { %v359_v3 = vmul.f32 %v628_v2, %v730_v15 }
 0x2f8   :  { %v365_v4 = vmul.f32 %v359_v3, %v352_v60  ;;  %v363_v5 = vrot.slane %v359_v3, %v284_v23 }
 0x2fa   :  { %v367_v6 = vrot.slane %v365_v4, 7  ;;  %v364_v8 = vmul.f32 %v363_v5, %v338_v44 }
 0x2fc   :  { %v369_v7 = vsub.f32 %v730_v15, %v367_v6 }
 0x2fe   :  { %v373_v9 = vrot.slane %v369_v7, %v294_v27 }
 0x300   :  { %v374_v10 = vadd.f32 %v373_v9, %v364_v8 }
 0x302   :  { %v375_v11 = vpack.c.bf16 %v374_v10, %v374_v10 }
 0x304   :  { %597 = vmatmul.mubr.bf16.vlgmr.msra.gmra.mxu1 %v375_v11 }
 0x3c4   :  { %v462_v16 = vpop.f32.mrf.mxu1 }
 0x3c5   :  { %v463_v17 = vadd.f32 %v462_v16, %v379_v14 }
 0x3c6   :  { %v598_v18 = vpop.f32.mrf.mxu1 }
 0x3c7   :  { %468 = vmax.xlane.f32.xlu0 %v463_v17 }
 0x3c8   :  { %v465_v19 = vpop.f32.mrf.mxu1 }
 0x3ca   :  { %v599_v20 = vpop.f32.mrf.mxu1 }
 0x450   :  { %v469_v21 = vpop.xlane.xlu0 %468 }
 0x451   :  { %v470_v22 = vsub.f32 %v463_v17, %v469_v21 }
 0x453   :  { %v471_v23 = vmul.f32 1.442695, %v470_v22 }
 0x455   :  { %629 = vpow2.f32 %v471_v23 }
 0x462   :  { %v630_v24 = vpop.eup %629 }
 0x463   :  { %473 = vadd.xlane.f32.xlu0 %v630_v24 }
 0x4ec   :  { %v474_v25 = vpop.xlane.xlu0 %473 }
 0x4ed   :  { %631 = vrcp.f32 %v474_v25 }
 0x4fa   :  { %v632_v26 = vpop.eup %631 }
 0x4fb   :  { %v476_v27 = vmul.f32 %v632_v26, %v474_v25 }
 0x4fd   :  { %v477_v28 = vsub.f32 2.0, %v476_v27 }
 0x4ff   :  { %v478_v13 = vmul.f32 %v632_v26, %v477_v28 }
 0x501   :  { %v479_v29 = vmul.f32 %v630_v24, %v478_v13 }
 0x503   :  { %480 = vst [vmem:[%s774_s2] sm:$0xff] %v479_v29 }
 0x504   :  { %485 = vsyncpa [#allocation3], 1 }
 0x505   :  { %486 = vsyncpa [#allocation5], 1 }

</bundles_post_ra>
